<compile_context>
chip_gen: v7x
topology: tpu7x:2x2x1
jax: 0.10.0
libtpu: 0.0.40
codegen_flags: <defaults>
</compile_context>

<pallas_src>
import functools

import jax
import jax.numpy as jnp
from jax.experimental import pallas as pl
from jax.experimental.pallas import tpu as pltpu

_VMEM_LIMIT = 32 * 1024 * 1024  # explicit scoped-VMEM budget (fits all gens)


def _round_up(v, m):
    return -(-v // m) * m


# ----------------------------------------------------------------------------
# Pallas kernels
# ----------------------------------------------------------------------------
def _conv_bias_kernel(x_ref, w_ref, bias_ref, o_ref, *, relu):
    # (TM, K) bf16 @ (K, TOC) bf16 on the MXU, f32 accumulation.
    acc = jnp.dot(x_ref[...], w_ref[...], preferred_element_type=jnp.float32)
    acc = acc + bias_ref[...]
    if relu:
        acc = jnp.maximum(acc, 0.0)
    o_ref[...] = acc.astype(o_ref.dtype)


def _conv_bias_res_kernel(x_ref, w_ref, bias_ref, res_ref, o_ref, *, relu):
    acc = jnp.dot(x_ref[...], w_ref[...], preferred_element_type=jnp.float32)
    acc = acc + bias_ref[...] + res_ref[...]
    if relu:
        acc = jnp.maximum(acc, 0.0)
    o_ref[...] = acc.astype(o_ref.dtype)


def _maxpool_kernel(x_ref, o_ref):
    # x_ref: (9, TM, C) stacked shifted windows -> elementwise max over axis 0.
    o_ref[...] = jnp.max(x_ref[...], axis=0)


# ----------------------------------------------------------------------------
# im2col (NHWC) + Pallas matmul with fused BN bias / residual / ReLU
# ----------------------------------------------------------------------------
def _im2col_nhwc(x, kh, kw, stride, pad):
    n, h, w, c = x.shape
    xp = jnp.pad(x, ((0, 0), (pad, pad), (pad, pad), (0, 0)))
    oh = (h + 2 * pad - kh) // stride + 1
    ow = (w + 2 * pad - kw) // stride + 1
    cols = []
    for i in range(kh):
        for j in range(kw):
            cols.append(
                xp[:, i:i + stride * (oh - 1) + 1:stride,
                      j:j + stride * (ow - 1) + 1:stride, :])  # (N,OH,OW,C)
    col = jnp.stack(cols, axis=3)                  # (N, OH, OW, KH*KW, C)
    col = col.reshape(n * oh * ow, kh * kw * c)    # k index = (i*KW + j)*C + c
    return col, oh, ow


def _pick_tm(m):
    # Per-call M tile: big enough to feed the 256-wide MXU when M allows,
    # no useless padding of tiny late-stage M (layer3/4 have M = 8 / 2).
    return 256 if m >= 256 else _round_up(m, 16)


def _matmul_bias(x2d, w2d, bias, res2d, relu):
    """x2d: (M, K) bf16, w2d: (K, OC) bf16 (BN scale folded), bias: (1, OC) f32,
    res2d: (M, OC) f32 or None."""
    m, k = x2d.shape
    _, oc = w2d.shape

    oc_pad = _round_up(oc, 128)            # lane-dense output stores
    tm = _pick_tm(m)
    m_pad = _round_up(m, tm)
    toc = min(oc_pad, 256)                 # OC-parallel axis for wide layers

    if m_pad != m:
        x2d = jnp.pad(x2d, ((0, m_pad - m), (0, 0)))
    if oc_pad != oc:
        w2d = jnp.pad(w2d, ((0, 0), (0, oc_pad - oc)))
        bias = jnp.pad(bias, ((0, 0), (0, oc_pad - oc)))

    grid = (m_pad // tm, oc_pad // toc)

    if res2d is not None:
        if m_pad != m or oc_pad != oc:
            res2d = jnp.pad(res2d, ((0, m_pad - m), (0, oc_pad - oc)))
        kernel = functools.partial(_conv_bias_res_kernel, relu=relu)
        in_specs = [
            pl.BlockSpec((tm, k), lambda i, j: (i, 0)),    # patches (bf16)
            pl.BlockSpec((k, toc), lambda i, j: (0, j)),   # weights (bf16)
            pl.BlockSpec((1, toc), lambda i, j: (0, j)),   # folded BN bias
            pl.BlockSpec((tm, toc), lambda i, j: (i, j)),  # residual (f32)
        ]
        operands = (x2d, w2d, bias, res2d)
    else:
        kernel = functools.partial(_conv_bias_kernel, relu=relu)
        in_specs = [
            pl.BlockSpec((tm, k), lambda i, j: (i, 0)),
            pl.BlockSpec((k, toc), lambda i, j: (0, j)),
            pl.BlockSpec((1, toc), lambda i, j: (0, j)),
        ]
        operands = (x2d, w2d, bias)

    out = pl.pallas_call(
        kernel,
        out_shape=jax.ShapeDtypeStruct((m_pad, oc_pad), jnp.float32),
        grid_spec=pltpu.PrefetchScalarGridSpec(
            num_scalar_prefetch=0,
            grid=grid,
            in_specs=in_specs,
            out_specs=pl.BlockSpec((tm, toc), lambda i, j: (i, j)),
        ),
        compiler_params=pltpu.CompilerParams(
            dimension_semantics=("parallel", "parallel"),
            vmem_limit_bytes=_VMEM_LIMIT),
    )(*operands)
    return out[:m, :oc]


def conv_bn_act(x, w, scale, bias, *, stride, pad, relu=True, residual=None):
    """x: NHWC activation. w: (OC, IC, KH, KW) PyTorch layout. Returns NHWC."""
    n, _, _, _ = x.shape
    oc, ic, kh, kw = w.shape
    col, oh, ow = _im2col_nhwc(x, kh, kw, stride, pad)
    # (OC, IC, KH, KW) -> (KH, KW, IC, OC) -> (K, OC); fold BN scale in.
    w2d = jnp.transpose(w, (2, 3, 1, 0)).reshape(kh * kw * ic, oc)
    w2d = w2d * scale[None, :]
    res2d = None
    if residual is not None:
        res2d = residual.reshape(n * oh * ow, oc).astype(jnp.float32)
    out2d = _matmul_bias(col.astype(jnp.bfloat16),
                         w2d.astype(jnp.bfloat16),
                         bias.reshape(1, oc).astype(jnp.float32),
                         res2d, relu)
    return out2d.reshape(n, oh, ow, oc)


# ----------------------------------------------------------------------------
# MaxPool 3x3 / stride 2 / pad 1 (NHWC)
# ----------------------------------------------------------------------------
def maxpool3x3_s2_p1(x):
    n, h, w, c = x.shape
    k, stride, pad = 3, 2, 1
    xp = jnp.pad(x, ((0, 0), (pad, pad), (pad, pad), (0, 0)),
                 constant_values=-jnp.inf)
    oh = (h + 2 * pad - k) // stride + 1
    ow = (w + 2 * pad - k) // stride + 1
    cols = []
    for i in range(k):
        for j in range(k):
            cols.append(
                xp[:, i:i + stride * (oh - 1) + 1:stride,
                      j:j + stride * (ow - 1) + 1:stride, :])
    m = n * oh * ow
    stacked = jnp.stack(cols, axis=0).reshape(k * k, m, c)  # (9, M, C)

    tm = min(256, _round_up(m, 8))
    m_pad = _round_up(m, tm)
    if m_pad != m:
        stacked = jnp.pad(stacked, ((0, 0), (0, m_pad - m), (0, 0)),
                          constant_values=-jnp.inf)

    out = pl.pallas_call(
        _maxpool_kernel,
        out_shape=jax.ShapeDtypeStruct((m_pad, c), jnp.float32),
        grid_spec=pltpu.PrefetchScalarGridSpec(
            num_scalar_prefetch=0,
            grid=(m_pad // tm,),
            in_specs=[pl.BlockSpec((k * k, tm, c), lambda i: (0, i, 0))],
            out_specs=pl.BlockSpec((tm, c), lambda i: (i, 0)),
        ),
        compiler_params=pltpu.CompilerParams(
            dimension_semantics=("parallel",),
            vmem_limit_bytes=_VMEM_LIMIT),
    )(stacked)
    return out[:m].reshape(n, oh, ow, c)


# ----------------------------------------------------------------------------
# Deterministic synthetic parameters (ResNet-18 shapes)
# ----------------------------------------------------------------------------
def _fold_bn(gamma, beta, mean, var, eps=1e-5):
    scale = gamma / jnp.sqrt(var + eps)
    bias = beta - mean * scale
    return scale, bias


def _make_conv_bn(key, oc, ic, k):
    k1, k2, k3, k4, k5 = jax.random.split(key, 5)
    fan_in = ic * k * k
    w = jax.random.normal(k1, (oc, ic, k, k), jnp.float32) * (2.0 / fan_in) ** 0.5
    gamma = 1.0 + 0.1 * jax.random.normal(k2, (oc,), jnp.float32)
    beta = 0.1 * jax.random.normal(k3, (oc,), jnp.float32)
    mean = 0.1 * jax.random.normal(k4, (oc,), jnp.float32)
    var = 1.0 + 0.1 * jax.random.uniform(k5, (oc,), jnp.float32)
    scale, bias = _fold_bn(gamma, beta, mean, var)
    return dict(w=w, scale=scale, bias=bias)


def init_resnet18_params(key):
    keys = iter(jax.random.split(key, 64))
    params = {"conv1": _make_conv_bn(next(keys), 64, 3, 7), "layers": []}
    in_c = 64
    for li, out_c in enumerate([64, 128, 256, 512]):
        blocks = []
        for bi in range(2):
            stride = 2 if (li > 0 and bi == 0) else 1
            blk = {
                "stride": stride,
                "conv1": _make_conv_bn(next(keys), out_c, in_c, 3),
                "conv2": _make_conv_bn(next(keys), out_c, out_c, 3),
            }
            if stride != 1 or in_c != out_c:
                blk["downsample"] = _make_conv_bn(next(keys), out_c, in_c, 1)
            blocks.append(blk)
            in_c = out_c
        params["layers"].append(blocks)
    return params


# ----------------------------------------------------------------------------
# Forward pass (mirrors torchvision ResNet-18 BasicBlock structure), NHWC inside
# ----------------------------------------------------------------------------
def basic_block(x, blk):
    stride = blk["stride"]
    if "downsample" in blk:
        ds = blk["downsample"]
        identity = conv_bn_act(x, ds["w"], ds["scale"], ds["bias"],
                               stride=stride, pad=0, relu=False)
    else:
        identity = x
    out = conv_bn_act(x, blk["conv1"]["w"], blk["conv1"]["scale"],
                      blk["conv1"]["bias"], stride=stride, pad=1, relu=True)
    # relu(bn2(conv2(out)) + identity), residual add fused into the kernel
    out = conv_bn_act(out, blk["conv2"]["w"], blk["conv2"]["scale"],
                      blk["conv2"]["bias"], stride=1, pad=1, relu=True,
                      residual=identity)
    return out


def resnet_forward(x, params):
    # x: NCHW (PyTorch layout). Transpose once to NHWC for the whole network.
    h = jnp.transpose(x, (0, 2, 3, 1))
    c1 = params["conv1"]
    h = conv_bn_act(h, c1["w"], c1["scale"], c1["bias"],
                    stride=2, pad=3, relu=True)
    h_relu1 = h
    h = maxpool3x3_s2_p1(h)
    stage_outs = []
    for blocks in params["layers"]:
        for blk in blocks:
            h = basic_block(h, blk)
        stage_outs.append(h)
    outs = (h_relu1,) + tuple(stage_outs)
    # (relu1, conv2, conv3, conv4, conv5), back to NCHW at the boundary.
    return tuple(jnp.transpose(o, (0, 3, 1, 2)) for o in outs)


if __name__ == "__main__":
    key = jax.random.PRNGKey(0)
    kx, kp = jax.random.split(key)
    x = jax.random.normal(kx, (2, 3, 32, 32), jnp.float32)  # NCHW, like PyTorch
    params = init_resnet18_params(kp)

    outs = resnet_forward(x, params)
    outs = jax.block_until_ready(outs)

    expected = [(2, 64, 16, 16), (2, 64, 8, 8), (2, 128, 4, 4),
                (2, 256, 2, 2), (2, 512, 1, 1)]
    for o, s in zip(outs, expected):
        assert o.shape == s, (o.shape, s)
        assert bool(jnp.all(jnp.isfinite(o)))

    print("KERNEL_OK")
</pallas_src>

<mosaic_0001>
module attributes {stable_mosaic.version = 11 : i64} {
  func.func @_conv_bias_kernel(%arg0: i32, %arg1: i32, %arg2: memref<256x147xbf16, #tpu.memory_space<vmem>>, %arg3: memref<147x128xbf16, #tpu.memory_space<vmem>>, %arg4: memref<1x128xf32, #tpu.memory_space<vmem>>, %arg5: memref<256x128xf32, #tpu.memory_space<vmem>>) attributes {dimension_semantics = [#tpu.dimension_semantics<parallel>, #tpu.dimension_semantics<parallel>], iteration_bounds = array<i64: 2, 1>, scalar_prefetch = 0 : i64, scratch_operands = 0 : i64, tpu.core_type = #tpu.core_type<tc>, window_params = [{transform_indices = @transform_0, window_bounds = array<i64: 256, 147>}, {transform_indices = @transform_1, window_bounds = array<i64: 147, 128>}, {transform_indices = @transform_2, window_bounds = array<i64: 1, 128>}, {transform_indices = @transform_3, window_bounds = array<i64: 256, 128>}]} {
    %c0 = arith.constant 0 : index
    %c0_0 = arith.constant 0 : index
    %0 = vector.load %arg2[%c0, %c0_0] : memref<256x147xbf16, #tpu.memory_space<vmem>>, vector<256x147xbf16>
    %c0_1 = arith.constant 0 : index
    %c0_2 = arith.constant 0 : index
    %1 = vector.load %arg3[%c0_1, %c0_2] : memref<147x128xbf16, #tpu.memory_space<vmem>>, vector<147x128xbf16>
    %cst = arith.constant dense<0.000000e+00> : vector<256x128xf32>
    %2 = tpu.matmul %0, %1, %cst {dimension_numbers = #tpu.dot_dimension_numbers<[1], [0], [0], [1], [0, 0, 1, 1], [], []>} : vector<256x147xbf16>, vector<147x128xbf16>, vector<256x128xf32> -> vector<256x128xf32>
    %c0_3 = arith.constant 0 : index
    %c0_4 = arith.constant 0 : index
    %3 = vector.load %arg4[%c0_3, %c0_4] : memref<1x128xf32, #tpu.memory_space<vmem>>, vector<1x128xf32>
    %4 = vector.broadcast %3 : vector<1x128xf32> to vector<256x128xf32>
    %5 = arith.addf %2, %4 : vector<256x128xf32>
    %cst_5 = arith.constant 0.000000e+00 : f32
    %6 = vector.broadcast %cst_5 : f32 to vector<256x128xf32>
    %7 = arith.maximumf %5, %6 : vector<256x128xf32>
    %c0_6 = arith.constant 0 : index
    %c0_7 = arith.constant 0 : index
    %8 = vector.load %arg5[%c0_6, %c0_7] : memref<256x128xf32, #tpu.memory_space<vmem>>, vector<256x128xf32>
    tpu.vector_store %arg5[%c0_6, %c0_7], %7 {strides = array<i32>} : memref<256x128xf32, #tpu.memory_space<vmem>>, vector<256x128xf32>,
    return
  }
  func.func @transform_0(%arg0: i32, %arg1: i32) -> (i32, i32) {
    %c0_i32 = arith.constant 0 : i32
    %c0_i32_0 = arith.constant 0 : i32
    return %arg0, %c0_i32 : i32, i32
  }
  func.func @transform_1(%arg0: i32, %arg1: i32) -> (i32, i32) {
    %c0_i32 = arith.constant 0 : i32
    %c0_i32_0 = arith.constant 0 : i32
    return %c0_i32, %arg1 : i32, i32
  }
  func.func @transform_2(%arg0: i32, %arg1: i32) -> (i32, i32) {
    %c0_i32 = arith.constant 0 : i32
    %c0_i32_0 = arith.constant 0 : i32
    return %c0_i32, %arg1 : i32, i32
  }
  func.func @transform_3(%arg0: i32, %arg1: i32) -> (i32, i32) {
    %c0_i32 = arith.constant 0 : i32
    return %arg0, %arg1 : i32, i32
  }
}

</mosaic_0001>

<bundles_post_ra>
// kernel: tpu_custom_call.1
= control target key start
LH: loop header
LB: loop body
LE: loop exit
PB: predicated region body
PF: predicated region fallthrough
CT: control target
= control target key end

     0   :  { %8 = vsyncpa [#allocation3], 0  ;;  %s1464_s0 = inlined_call_operand.vmem [shape: bf16[512,147], index: 0, kind: input, shape index: {}]   ;;  %s1465_s1 = inlined_call_operand.vmem [shape: bf16[147,128], index: 1, kind: input, shape index: {}]   ;;  %s1466_s2 = inlined_call_operand.vmem [shape: f32[1,128], index: 2, kind: input, shape index: {}]   ;;  %s1467_s3 = inlined_call_operand.hbm [shape: f32[512,128], index: 3, kind: output, shape index: {}]  }
   0x1   :  { %10 = vsyncpa [#allocation3 + $0x1], 0  ;;  %s1194_s12 = smov 0   ;;  %s1196_s13 = smov 0  }
   0x2   :  { %s1198_s14 = smov 0   ;;  %s1200_s15 = smov 0  }
   0x3   :  { %s1202_s16 = smov 0   ;;  %s1204_s17 = smov 0  }
   0x4 LB: > { %s875_s18 = sadd.s32 4294967295, %s1167_s17   ;;  %s876_s19 = sadd.s32 4294967294, %s1167_s17   ;;  %s1167_s17 = sphi %s1204_s17, %s16_s17   ;;  %s1163_s16 = sphi %s1202_s16, %s1474_s16   ;;  %s1159_s15 = sphi %s1200_s15, %s1473_s15   ;;  %s1155_s14 = sphi %s1198_s14, %s1472_s14   ;;  %s1151_s13 = sphi %s1196_s13, %s1471_s13   ;;  %s1147_s12 = sphi %s1194_s12, %s1470_s12  }
   0x5   : > { %s28_s20 = sadd.s32 1, %s1163_s16  ;;  %s115_s21 = sadd.s32 1, %s1155_s14 }
   0x6   : > { %p30_p0 = scmp.ge.s32.totalorder %s28_s20, 2  ;;  %p125_p1 = scmp.ne.s32.totalorder %s1155_s14, %s1151_s13 }
   0x7   : > { %p126_p2 = scmp.eq.s32.totalorder %s875_s18, 1  ;;  %p131_p3 = scmp.ne.s32.totalorder %s1151_s13, %s1147_s12 }
   0x8   : > { %s1476_s20 = smov (%p30_p0, %s28_s20), 0  ;;  %p132_p5 = scmp.eq.s32.totalorder %s876_s19, 1 }
   0x9   : > { %p1234_p4 = por %p126_p2, %p125_p1  ;;  %s110_s23 = ssub.s32 %s1163_s16, %s1476_s20 }
   0xa   : > { %p881_p6 = scmp.ge.s32.totalorder %s1167_s17, 1  ;;  %p113_p7 = scmp.eq.s32.totalorder %s110_s23, 0 }
   0xb   : > { %p1241_p8 = por %p132_p5, %p131_p3  ;;  %p173_p9 = scmp.lt.s32.totalorder %s1167_s17, 3 }
   0xc   : > { %s1247_s25 = scalar_select %p113_p7, %s1155_s14, %s115_s21  }
   0xd   : > { %p174_p10 = pnand %p881_p6, %p173_p9 }
   0xe   : > { %v1031_v0 = vld [vmem:[%s1465_s1] sm:$0xff] (!%p174_p10)   ;;  %v1169_v1 = vmov (!%p174_p10), 0   ;;  %v1032_v2 = vld [vmem:[%s1465_s1 + $0x8] sm:$0xff] (!%p174_p10)   ;;  %v1033_v3 = vld [vmem:[%s1465_s1 + $0x10] sm:$0xff] (!%p174_p10)   ;;  %s883_s5 = sshll.u32 (!%p174_p10), %s1159_s15, 5  ;;  %vm480_vm0 = vcmask (!%p174_p10), 154624  }
   0xf   : > { %177 = sbr.rel (%p174_p10) target bundleno = 344 (0x158), region = 32  ;;  %536 = vmatprep.subr.bf16.mxu0 (!%p174_p10), %v1169_v1  ;;  %952 = vmatprep.subr.bf16.mxu1 (!%p174_p10), %v1169_v1  ;;  %p206_p11 = scmp.lt.s32.totalorder (!%p174_p10), %s883_s5, 63  ;;  %v1034_v4 = vld [vmem:[%s1465_s1 + $0x18] sm:$0xff] (!%p174_p10)   ;;  %v1035_v5 = vld [vmem:[%s1465_s1 + $0x20] sm:$0xff] (!%p174_p10)   ;;  %v1036_v8 = vld [vmem:[%s1465_s1 + $0x28] sm:$0xff] (!%p174_p10)   ;;  %vm529_vm1 = vcmask (!%p174_p10), 1040384  }
  0x10   : > { %537 = vmatpush1.bf16.msra.mxu0 (!%p174_p10), %v1031_v0  ;;  %962 = vmatpush1.bf16.msra.mxu1 (!%p174_p10), %v1031_v0  ;;  %v1037_v9 = vld [vmem:[%s1465_s1 + $0x30] sm:$0xff] (!%p174_p10)   ;;  %v1038_v10 = vld [vmem:[%s1465_s1 + $0x38] sm:$0xff] (!%p174_p10)   ;;  %vm530_vm2 = vcmask (!%p174_p10), 1041408   ;;  %v1170_v11 = vmov (!%p174_p10), 65535   ;;  %v1039_v13 = vld [vmem:[%s1465_s1 + $0x40] sm:$0xff] (!%p174_p10)   ;;  %s202_s7 = sand.u32 (!%p174_p10), 1, %s1151_s13  }
  0x11   : > { %538 = vmatprep.subr.bf16.mxu0 (!%p174_p10), %v1169_v1  ;;  %953 = vmatprep.subr.bf16.mxu1 (!%p174_p10), %v1169_v1  ;;  %v531_v12 = vsel (!%p174_p10), %vm529_vm1, 4294967295, %v1170_v11  ;;  %v1040_v14 = vld [vmem:[%s1465_s1 + $0x48] ss:$0 sps:$4 sm:$0x33] (!%p174_p10)   ;;  %v1337_v47 = vld [vmem:[%s1466_s2] ss:$0 sm:$0xff] (!%p174_p10) }
  0x12   : > { %v532_v15 = vsel (!%p174_p10), %vm530_vm2, %v531_v12, 0  ;;  %s882_s10 = sshll.u32 (!%p174_p10), %s202_s7, 8  ;;  %s951_s18 = sshll.u32 (!%p174_p10), %s1159_s15, 12 }
  0x13   : > { %v534_v16 = vand.u32 (!%p174_p10), %v1040_v14, %v532_v15  ;;  %s1408_s26 = scalar_lea.hbm (!%p174_p10), %s1467_s3, %s951_s18  ;;  %s1418_s15 = scalar_lea.sflag (!%p174_p10), [#allocation3], %s202_s7 }
  0x14   : > { %539 = vmatpush1.bf16.msra.mxu0 (!%p174_p10), %v1032_v2  ;;  %963 = vmatpush1.bf16.msra.mxu1 (!%p174_p10), %v1032_v2  ;;  %s1171_s28 = smov (!%p174_p10), [#allocation2]  }
  0x15   : > { %540 = vmatprep.subr.bf16.mxu0 (!%p174_p10), %v1169_v1  ;;  %954 = vmatprep.subr.bf16.mxu1 (!%p174_p10), %v1169_v1  ;;  %s1093_s29 = sshll.u32 (!%p174_p10), %s1171_s28, 4  ;;  %s1094_s29 = int_to_ptr.vmem [resolvable:$false] %s1093_s29 }
  0x16   : > { %s1478_s5 = smov (!%p206_p11, %s883_s5), 63  ;;  %s1095_s30 = scalar_lea.vmem %s1094_s29, 8192 }
  0x17   : > { %s950_s8 = sshll.u32 %s1478_s5, 3 }
  0x18   : > { %541 = vmatpush1.bf16.msra.mxu0 %v1033_v3  ;;  %964 = vmatpush1.bf16.msra.mxu1 %v1033_v3  ;;  %s1265_s11 = scalar_lea.vmem %s1464_s0, %s950_s8 }
  0x19   : > { %542 = vmatprep.subr.bf16.mxu0 %v1169_v1  ;;  %955 = vmatprep.subr.bf16.mxu1 %v1169_v1  ;;  %v1043_v6 = vld [vmem:[%s1265_s11 + $0x4] ss:$8 sps:$4 sm:$0xff]   ;;  %v1041_v17 = vld [vmem:[%s1265_s11] ss:$8 sps:$4 sm:$0xff]   ;;  %v1047_v19 = vld [vmem:[%s1265_s11 + $0x14] ss:$8 sps:$4 sm:$0xff]  }
  0x1a   : > { %v1046_v7 = vld [vmem:[%s1265_s11 + $0x84] ss:$8 sps:$4 sm:$0xff]   ;;  %929 = vmatprep.mubr.msk.bf16.mxu0 %vm480_vm0, %v1043_v6  ;;  %v1044_v18 = vld [vmem:[%s1265_s11 + $0x80] ss:$8 sps:$4 sm:$0xff]   ;;  %v1049_v20 = vld [vmem:[%s1265_s11 + $0x94] ss:$8 sps:$4 sm:$0xff]  }
  0x1b   : > { %937 = vmatprep.mubr.msk.bf16.mxu1 %vm480_vm0, %v1046_v7  ;;  %v1051_v21 = vld [vmem:[%s1265_s11 + $0x10] ss:$8 sps:$4 sm:$0xff]   ;;  %v1053_v23 = vld [vmem:[%s1265_s11 + $0x24] ss:$8 sps:$4 sm:$0xff]   ;;  %v1057_v25 = vld [vmem:[%s1265_s11 + $0x20] ss:$8 sps:$4 sm:$0xff]  }
  0x1c   : > { %543 = vmatpush1.bf16.msra.mxu0 %v1034_v4  ;;  %965 = vmatpush1.bf16.msra.mxu1 %v1034_v4  ;;  %v1052_v22 = vld [vmem:[%s1265_s11 + $0x90] ss:$8 sps:$4 sm:$0xff]   ;;  %v1055_v24 = vld [vmem:[%s1265_s11 + $0xa4] ss:$8 sps:$4 sm:$0xff]   ;;  %v1058_v26 = vld [vmem:[%s1265_s11 + $0xa0] ss:$8 sps:$4 sm:$0xff]  }
  0x1d   : > { %544 = vmatprep.subr.bf16.mxu0 %v1169_v1  ;;  %956 = vmatprep.subr.bf16.mxu1 %v1169_v1  ;;  %v1059_v27 = vld [vmem:[%s1265_s11 + $0x34] ss:$8 sps:$4 sm:$0xff]   ;;  %v1063_v29 = vld [vmem:[%s1265_s11 + $0x30] ss:$8 sps:$4 sm:$0xff]   ;;  %v1065_v31 = vld [vmem:[%s1265_s11 + $0x44] ss:$8 sps:$4 sm:$0xff]  }
  0x1e   : > { %v1061_v28 = vld [vmem:[%s1265_s11 + $0xb4] ss:$8 sps:$4 sm:$0xff]   ;;  %v1064_v30 = vld [vmem:[%s1265_s11 + $0xb0] ss:$8 sps:$4 sm:$0xff]   ;;  %v1067_v32 = vld [vmem:[%s1265_s11 + $0xc4] ss:$8 sps:$4 sm:$0xff]  }
  0x1f   : > { %v1069_v33 = vld [vmem:[%s1265_s11 + $0x40] ss:$8 sps:$4 sm:$0xff]   ;;  %v1071_v35 = vld [vmem:[%s1265_s11 + $0x54] ss:$8 sps:$4 sm:$0xff]   ;;  %v1075_v37 = vld [vmem:[%s1265_s11 + $0x50] ss:$8 sps:$4 sm:$0xff]  }
  0x20   : > { %545 = vmatpush1.bf16.msra.mxu0 %v1035_v5  ;;  %966 = vmatpush1.bf16.msra.mxu1 %v1035_v5  ;;  %v1070_v34 = vld [vmem:[%s1265_s11 + $0xc0] ss:$8 sps:$4 sm:$0xff]   ;;  %v1073_v36 = vld [vmem:[%s1265_s11 + $0xd4] ss:$8 sps:$4 sm:$0xff]   ;;  %v1076_v38 = vld [vmem:[%s1265_s11 + $0xd0] ss:$8 sps:$4 sm:$0xff]  }
  0x21   : > { %546 = vmatprep.subr.bf16.mxu0 %v1169_v1  ;;  %957 = vmatprep.subr.bf16.mxu1 %v1169_v1  ;;  %v1077_v39 = vld [vmem:[%s1265_s11 + $0x64] ss:$8 sps:$4 sm:$0xff]   ;;  %v1081_v41 = vld [vmem:[%s1265_s11 + $0x60] ss:$8 sps:$4 sm:$0xff]   ;;  %v1083_v43 = vld [vmem:[%s1265_s11 + $0x74] ss:$8 sps:$4 sm:$0xff]  }
  0x22   : > { %v1079_v40 = vld [vmem:[%s1265_s11 + $0xe4] ss:$8 sps:$4 sm:$0xff]   ;;  %v1082_v42 = vld [vmem:[%s1265_s11 + $0xe0] ss:$8 sps:$4 sm:$0xff]   ;;  %v1085_v44 = vld [vmem:[%s1265_s11 + $0xf4] ss:$8 sps:$4 sm:$0xff]  }
  0x23   : > { %v1087_v45 = vld [vmem:[%s1265_s11 + $0x70] ss:$8 sps:$4 sm:$0xff]  }
  0x24   : > { %547 = vmatpush1.bf16.msra.mxu0 %v1036_v8  ;;  %967 = vmatpush1.bf16.msra.mxu1 %v1036_v8  ;;  %v1088_v46 = vld [vmem:[%s1265_s11 + $0xf0] ss:$8 sps:$4 sm:$0xff]   ;;  %s1345_s11 = scalar_lea.vmem [#allocation2], %s882_s10 }
  0x25   : > { %548 = vmatprep.subr.bf16.mxu0 %v1169_v1  ;;  %958 = vmatprep.subr.bf16.mxu1 %v1169_v1  ;;  %s776_s19 = sshll.u32 %s1345_s11, 4  ;;  %s1410_s19 = int_to_ptr.vmem [resolvable:$true] %s776_s19 }
  0x26   : > { %s1089_s27 = scalar_lea.vmem %s1410_s19, 4096  ;;  %p1096_p1 = scmp.lt.s32.totalorder %s1410_s19, %s1094_s29 }
  0x27   : > { %p1090_p12 = scmp.ne.s32.totalorder %s1410_s19, %s1089_s27  ;;  %p1097_p2 = scmp.lt.s32.totalorder %s1095_s30, %s1089_s27 }
  0x28   : > { %549 = vmatpush1.bf16.msra.mxu0 %v1037_v9  ;;  %968 = vmatpush1.bf16.msra.mxu1 %v1037_v9 }
  0x29   : > { %550 = vmatprep.subr.bf16.mxu0 %v1169_v1  ;;  %959 = vmatprep.subr.bf16.mxu1 %v1169_v1  ;;  %p1091_p13 = pnand %p1090_p12, %p1234_p4  ;;  %p1098_p3 = por %p1097_p2, %p1096_p1 }
  0x2b   : > { %p1092_p0 = pneg %p1091_p13 }
  0x2c   : > { %551 = vmatpush1.bf16.msra.mxu0 %v1038_v10  ;;  %969 = vmatpush1.bf16.msra.mxu1 %v1038_v10 }
  0x2d   : > { %552 = vmatprep.subr.bf16.mxu0 %v1169_v1  ;;  %960 = vmatprep.subr.bf16.mxu1 %v1169_v1  ;;  %p1099_p5 = pnand %p1098_p3, %p1092_p0 }
  0x30   : > { %553 = vmatpush1.bf16.msra.mxu0 %v1039_v13  ;;  %970 = vmatpush1.bf16.msra.mxu1 %v1039_v13 }
  0x31   : > { %554 = vmatprep.subr.bf16.mxu0 %v1169_v1  ;;  %961 = vmatprep.subr.bf16.mxu1 %v1169_v1 }
  0x34   : > { %555 = vmatpush1.bf16.msra.mxu0 %v534_v16  ;;  %971 = vmatpush1.bf16.msra.mxu1 %v534_v16 }
  0x37   : > { %569 = vmatmul.mubr.bf16.vlgmr.msra.gmra.mrb[0].mxu0 %v1041_v17  ;;  %633 = vmatmul.mubr.bf16.vlgmr.msra.gmra.mrb[0].mxu1 %v1044_v18 }
  0x38   : > { %930 = vmatprep.mubr.msk.bf16.mxu0 %vm480_vm0, %v1047_v19  ;;  %938 = vmatprep.mubr.msk.bf16.mxu1 %vm480_vm0, %v1049_v20 }
  0x3f   : > { %577 = vmatmul.mubr.bf16.gmra.mrb[4].mxu0 %v1051_v21  ;;  %641 = vmatmul.mubr.bf16.gmra.mrb[4].mxu1 %v1052_v22 }
  0x40   : > { %931 = vmatprep.mubr.msk.bf16.mxu0 %vm480_vm0, %v1053_v23  ;;  %939 = vmatprep.mubr.msk.bf16.mxu1 %vm480_vm0, %v1055_v24 }
  0x47   : > { %585 = vmatmul.mubr.bf16.gmra.mrb[8].mxu0 %v1057_v25  ;;  %649 = vmatmul.mubr.bf16.gmra.mrb[8].mxu1 %v1058_v26 }
  0x48   : > { %932 = vmatprep.mubr.msk.bf16.mxu0 %vm480_vm0, %v1059_v27  ;;  %940 = vmatprep.mubr.msk.bf16.mxu1 %vm480_vm0, %v1061_v28 }
  0x4f   : > { %593 = vmatmul.mubr.bf16.gmra.mrb[12].mxu0 %v1063_v29  ;;  %657 = vmatmul.mubr.bf16.gmra.mrb[12].mxu1 %v1064_v30 }
  0x50   : > { %933 = vmatprep.mubr.msk.bf16.mxu0 %vm480_vm0, %v1065_v31  ;;  %941 = vmatprep.mubr.msk.bf16.mxu1 %vm480_vm0, %v1067_v32 }
  0x57   : > { %601 = vmatmul.mubr.bf16.gmra.mrb[16].mxu0 %v1069_v33  ;;  %665 = vmatmul.mubr.bf16.gmra.mrb[16].mxu1 %v1070_v34 }
  0x58   : > { %934 = vmatprep.mubr.msk.bf16.mxu0 %vm480_vm0, %v1071_v35  ;;  %942 = vmatprep.mubr.msk.bf16.mxu1 %vm480_vm0, %v1073_v36 }
  0x5f   : > { %609 = vmatmul.mubr.bf16.gmra.mrb[20].mxu0 %v1075_v37  ;;  %673 = vmatmul.mubr.bf16.gmra.mrb[20].mxu1 %v1076_v38 }
  0x60   : > { %935 = vmatprep.mubr.msk.bf16.mxu0 %vm480_vm0, %v1077_v39  ;;  %943 = vmatprep.mubr.msk.bf16.mxu1 %vm480_vm0, %v1079_v40 }
  0x67   : > { %617 = vmatmul.mubr.bf16.gmra.mrb[24].mxu0 %v1081_v41  ;;  %681 = vmatmul.mubr.bf16.gmra.mrb[24].mxu1 %v1082_v42 }
  0x68   : > { %936 = vmatprep.mubr.msk.bf16.mxu0 %vm480_vm0, %v1083_v43  ;;  %944 = vmatprep.mubr.msk.bf16.mxu1 %vm480_vm0, %v1085_v44 }
  0x6f   : > { %625 = vmatmul.mubr.bf16.gmra.mrb[28].mxu0 %v1087_v45  ;;  %689 = vmatmul.mubr.bf16.gmra.mrb[28].mxu1 %v1088_v46 }
 0x10a   : > { %v570_v48 = vpop.f32.mrb[0].mxu0  ;;  %v634_v49 = vpop.f32.mrb[0].mxu1 }
 0x10b   : > { %v571_v50 = vadd.f32 %v1337_v47, %v570_v48  ;;  %v635_v51 = vadd.f32 %v1337_v47, %v634_v49  ;;  %v572_v52 = vpop.f32.mrb[1].mxu0  ;;  %v636_v53 = vpop.f32.mrb[1].mxu1 }
 0x10c   : > { %v573_v54 = vpop.f32.mrb[2].mxu0  ;;  %v637_v55 = vpop.f32.mrb[2].mxu1 }
 0x10d   : > { %v697_v56 = vmax.f32 %v571_v50, 0.0  ;;  %v713_v57 = vmax.f32 %v635_v51, 0.0  ;;  %v574_v58 = vadd.f32 %v1337_v47, %v573_v54  ;;  %v638_v59 = vadd.f32 %v1337_v47, %v637_v55  ;;  %v575_v60 = vpop.f32.mrb[3].mxu0  ;;  %v639_v61 = vpop.f32.mrb[3].mxu1 }
 0x10f   : > { %729 = vst [vmem:[%s1345_s11] sm:$0xff] %v697_v56  ;;  %745 = vst [vmem:[%s1345_s11 + $0x80] sm:$0xff] %v713_v57  ;;  %v698_v62 = vmax.f32 %v574_v58, 0.0  ;;  %v714_v63 = vmax.f32 %v638_v59, 0.0 }
 0x111   : > { %730 = vst [vmem:[%s1345_s11 + $0x8] sm:$0xff] %v698_v62  ;;  %746 = vst [vmem:[%s1345_s11 + $0x88] sm:$0xff] %v714_v63 }
 0x112   : > { %v578_v0 = vpop.f32.mrb[4].mxu0  ;;  %v642_v1 = vpop.f32.mrb[4].mxu1 }
 0x113   : > { %v579_v2 = vadd.f32 %v1337_v47, %v578_v0  ;;  %v643_v3 = vadd.f32 %v1337_v47, %v642_v1  ;;  %v580_v4 = vpop.f32.mrb[5].mxu0  ;;  %v644_v5 = vpop.f32.mrb[5].mxu1 }
 0x114   : > { %v581_v6 = vpop.f32.mrb[6].mxu0  ;;  %v645_v7 = vpop.f32.mrb[6].mxu1 }
 0x115   : > { %v699_v8 = vmax.f32 %v579_v2, 0.0  ;;  %v715_v9 = vmax.f32 %v643_v3, 0.0  ;;  %v582_v10 = vadd.f32 %v1337_v47, %v581_v6  ;;  %v646_v11 = vadd.f32 %v1337_v47, %v645_v7  ;;  %v583_v12 = vpop.f32.mrb[7].mxu0  ;;  %v647_v13 = vpop.f32.mrb[7].mxu1 }
 0x117   : > { %731 = vst [vmem:[%s1345_s11 + $0x10] sm:$0xff] %v699_v8  ;;  %747 = vst [vmem:[%s1345_s11 + $0x90] sm:$0xff] %v715_v9  ;;  %v700_v14 = vmax.f32 %v582_v10, 0.0  ;;  %v716_v15 = vmax.f32 %v646_v11, 0.0 }
 0x119   : > { %732 = vst [vmem:[%s1345_s11 + $0x18] sm:$0xff] %v700_v14  ;;  %748 = vst [vmem:[%s1345_s11 + $0x98] sm:$0xff] %v716_v15 }
 0x11a   : > { %v586_v16 = vpop.f32.mrb[8].mxu0  ;;  %v650_v17 = vpop.f32.mrb[8].mxu1 }
 0x11b   : > { %v587_v18 = vadd.f32 %v1337_v47, %v586_v16  ;;  %v651_v19 = vadd.f32 %v1337_v47, %v650_v17  ;;  %v588_v20 = vpop.f32.mrb[9].mxu0  ;;  %v652_v21 = vpop.f32.mrb[9].mxu1 }
 0x11c   : > { %v589_v22 = vpop.f32.mrb[10].mxu0  ;;  %v653_v23 = vpop.f32.mrb[10].mxu1 }
 0x11d   : > { %v701_v24 = vmax.f32 %v587_v18, 0.0  ;;  %v717_v25 = vmax.f32 %v651_v19, 0.0  ;;  %v590_v26 = vadd.f32 %v1337_v47, %v589_v22  ;;  %v654_v27 = vadd.f32 %v1337_v47, %v653_v23  ;;  %v591_v28 = vpop.f32.mrb[11].mxu0  ;;  %v655_v29 = vpop.f32.mrb[11].mxu1 }
 0x11f   : > { %733 = vst [vmem:[%s1345_s11 + $0x20] sm:$0xff] %v701_v24  ;;  %749 = vst [vmem:[%s1345_s11 + $0xa0] sm:$0xff] %v717_v25  ;;  %v702_v30 = vmax.f32 %v590_v26, 0.0  ;;  %v718_v31 = vmax.f32 %v654_v27, 0.0 }
 0x121   : > { %734 = vst [vmem:[%s1345_s11 + $0x28] sm:$0xff] %v702_v30  ;;  %750 = vst [vmem:[%s1345_s11 + $0xa8] sm:$0xff] %v718_v31 }
 0x122   : > { %v594_v32 = vpop.f32.mrb[12].mxu0  ;;  %v658_v33 = vpop.f32.mrb[12].mxu1 }
 0x123   : > { %v595_v34 = vadd.f32 %v1337_v47, %v594_v32  ;;  %v659_v35 = vadd.f32 %v1337_v47, %v658_v33  ;;  %v596_v36 = vpop.f32.mrb[13].mxu0  ;;  %v660_v37 = vpop.f32.mrb[13].mxu1 }
 0x124   : > { %v597_v38 = vpop.f32.mrb[14].mxu0  ;;  %v661_v39 = vpop.f32.mrb[14].mxu1 }
 0x125   : > { %v703_v40 = vmax.f32 %v595_v34, 0.0  ;;  %v719_v41 = vmax.f32 %v659_v35, 0.0  ;;  %v598_v42 = vadd.f32 %v1337_v47, %v597_v38  ;;  %v662_v43 = vadd.f32 %v1337_v47, %v661_v39  ;;  %v599_v44 = vpop.f32.mrb[15].mxu0  ;;  %v663_v45 = vpop.f32.mrb[15].mxu1 }
 0x127   : > { %735 = vst [vmem:[%s1345_s11 + $0x30] sm:$0xff] %v703_v40  ;;  %751 = vst [vmem:[%s1345_s11 + $0xb0] sm:$0xff] %v719_v41  ;;  %v704_v46 = vmax.f32 %v598_v42, 0.0  ;;  %v720_v48 = vmax.f32 %v662_v43, 0.0 }
 0x129   : > { %736 = vst [vmem:[%s1345_s11 + $0x38] sm:$0xff] %v704_v46  ;;  %752 = vst [vmem:[%s1345_s11 + $0xb8] sm:$0xff] %v720_v48 }
 0x12a   : > { %v602_v49 = vpop.f32.mrb[16].mxu0  ;;  %v666_v50 = vpop.f32.mrb[16].mxu1 }
 0x12b   : > { %v603_v51 = vadd.f32 %v1337_v47, %v602_v49  ;;  %v667_v52 = vadd.f32 %v1337_v47, %v666_v50  ;;  %v604_v53 = vpop.f32.mrb[17].mxu0  ;;  %v668_v54 = vpop.f32.mrb[17].mxu1 }
 0x12c   : > { %v605_v55 = vpop.f32.mrb[18].mxu0  ;;  %v669_v56 = vpop.f32.mrb[18].mxu1 }
 0x12d   : > { %v705_v57 = vmax.f32 %v603_v51, 0.0  ;;  %v721_v58 = vmax.f32 %v667_v52, 0.0  ;;  %v606_v59 = vadd.f32 %v1337_v47, %v605_v55  ;;  %v670_v60 = vadd.f32 %v1337_v47, %v669_v56  ;;  %v607_v61 = vpop.f32.mrb[19].mxu0  ;;  %v671_v62 = vpop.f32.mrb[19].mxu1 }
 0x12f   : > { %737 = vst [vmem:[%s1345_s11 + $0x40] sm:$0xff] %v705_v57  ;;  %753 = vst [vmem:[%s1345_s11 + $0xc0] sm:$0xff] %v721_v58  ;;  %v706_v63 = vmax.f32 %v606_v59, 0.0  ;;  %v722_v0 = vmax.f32 %v670_v60, 0.0 }
 0x131   : > { %738 = vst [vmem:[%s1345_s11 + $0x48] sm:$0xff] %v706_v63  ;;  %754 = vst [vmem:[%s1345_s11 + $0xc8] sm:$0xff] %v722_v0 }
 0x132   : > { %v610_v1 = vpop.f32.mrb[20].mxu0  ;;  %v674_v2 = vpop.f32.mrb[20].mxu1 }
 0x133   : > { %v611_v3 = vadd.f32 %v1337_v47, %v610_v1  ;;  %v675_v4 = vadd.f32 %v1337_v47, %v674_v2  ;;  %v612_v5 = vpop.f32.mrb[21].mxu0  ;;  %v676_v6 = vpop.f32.mrb[21].mxu1 }
 0x134   : > { %v613_v7 = vpop.f32.mrb[22].mxu0  ;;  %v677_v8 = vpop.f32.mrb[22].mxu1 }
 0x135   : > { %v707_v9 = vmax.f32 %v611_v3, 0.0  ;;  %v723_v10 = vmax.f32 %v675_v4, 0.0  ;;  %v614_v11 = vadd.f32 %v1337_v47, %v613_v7  ;;  %v678_v12 = vadd.f32 %v1337_v47, %v677_v8  ;;  %v615_v13 = vpop.f32.mrb[23].mxu0  ;;  %v679_v14 = vpop.f32.mrb[23].mxu1 }
 0x137   : > { %739 = vst [vmem:[%s1345_s11 + $0x50] sm:$0xff] %v707_v9  ;;  %755 = vst [vmem:[%s1345_s11 + $0xd0] sm:$0xff] %v723_v10  ;;  %v708_v15 = vmax.f32 %v614_v11, 0.0  ;;  %v724_v16 = vmax.f32 %v678_v12, 0.0 }
 0x139   : > { %740 = vst [vmem:[%s1345_s11 + $0x58] sm:$0xff] %v708_v15  ;;  %756 = vst [vmem:[%s1345_s11 + $0xd8] sm:$0xff] %v724_v16 }
 0x13a   : > { %v618_v17 = vpop.f32.mrb[24].mxu0  ;;  %v682_v18 = vpop.f32.mrb[24].mxu1 }
 0x13b   : > { %v619_v19 = vadd.f32 %v1337_v47, %v618_v17  ;;  %v683_v20 = vadd.f32 %v1337_v47, %v682_v18  ;;  %v620_v21 = vpop.f32.mrb[25].mxu0  ;;  %v684_v22 = vpop.f32.mrb[25].mxu1 }
 0x13c   : > { %v621_v23 = vpop.f32.mrb[26].mxu0  ;;  %v685_v24 = vpop.f32.mrb[26].mxu1 }
 0x13d   : > { %v709_v25 = vmax.f32 %v619_v19, 0.0  ;;  %v725_v26 = vmax.f32 %v683_v20, 0.0  ;;  %v622_v27 = vadd.f32 %v1337_v47, %v621_v23  ;;  %v686_v28 = vadd.f32 %v1337_v47, %v685_v24  ;;  %v623_v29 = vpop.f32.mrb[27].mxu0  ;;  %v687_v30 = vpop.f32.mrb[27].mxu1 }
 0x13f   : > { %741 = vst [vmem:[%s1345_s11 + $0x60] sm:$0xff] %v709_v25  ;;  %757 = vst [vmem:[%s1345_s11 + $0xe0] sm:$0xff] %v725_v26  ;;  %v710_v31 = vmax.f32 %v622_v27, 0.0  ;;  %v726_v32 = vmax.f32 %v686_v28, 0.0 }
 0x141   : > { %742 = vst [vmem:[%s1345_s11 + $0x68] sm:$0xff] %v710_v31  ;;  %758 = vst [vmem:[%s1345_s11 + $0xe8] sm:$0xff] %v726_v32 }
 0x142   : > { %v626_v33 = vpop.f32.mrb[28].mxu0  ;;  %v690_v34 = vpop.f32.mrb[28].mxu1 }
 0x143   : > { %v627_v35 = vadd.f32 %v1337_v47, %v626_v33  ;;  %v691_v36 = vadd.f32 %v1337_v47, %v690_v34  ;;  %v628_v37 = vpop.f32.mrb[29].mxu0  ;;  %v692_v38 = vpop.f32.mrb[29].mxu1 }
 0x144   : > { %v629_v39 = vpop.f32.mrb[30].mxu0  ;;  %v693_v40 = vpop.f32.mrb[30].mxu1 }
 0x145   : > { %v711_v41 = vmax.f32 %v627_v35, 0.0  ;;  %v727_v42 = vmax.f32 %v691_v36, 0.0  ;;  %v630_v43 = vadd.f32 %v1337_v47, %v629_v39  ;;  %v694_v44 = vadd.f32 %v1337_v47, %v693_v40  ;;  %v631_v45 = vpop.f32.mrb[31].mxu0  ;;  %v695_v46 = vpop.f32.mrb[31].mxu1 }
 0x147   : > { %743 = vst [vmem:[%s1345_s11 + $0x70] sm:$0xff] %v711_v41  ;;  %759 = vst [vmem:[%s1345_s11 + $0xf0] sm:$0xff] %v727_v42  ;;  %v712_v48 = vmax.f32 %v630_v43, 0.0  ;;  %v728_v49 = vmax.f32 %v694_v44, 0.0 }
 0x149   : > { %744 = vst [vmem:[%s1345_s11 + $0x78] sm:$0xff] %v712_v48  ;;  %760 = vst [vmem:[%s1345_s11 + $0xf8] sm:$0xff] %v728_v49 }
 0x14a   : > { %1102 = shalt.err (!%p1099_p5)
}
 0x14b   : > { %s1103_s4 = scalar_lea.hbm %s1408_s26, 4096  ;;  %s1107_s7 = scalar_lea.hbm %s1467_s3, 8192 }
 0x14c   : > { %p1104_p6 = scmp.ne.s32.totalorder %s1408_s26, %s1103_s4  ;;  %p1108_p10 = scmp.lt.u32.totalorder %s1408_s26, %s1467_s3 }
 0x14d   : > { %p1109_p11 = scmp.lt.u32.totalorder %s1107_s7, %s1103_s4  ;;  %p1111_p13 = scmp.lt.u32.totalorder %s1103_s4, %s1408_s26 }
 0x14e   : > { %p1105_p7 = pnand %p1104_p6, %p1234_p4 }
 0x14f   : > { %p1110_p12 = por %p1109_p11, %p1108_p10 }
 0x150   : > { %p1106_p9 = pneg %p1105_p7 }
 0x151   : > { %p1112_p0 = por %p1111_p13, %p1110_p12 }
 0x153   : > { %p1113_p1 = pnand %p1112_p0, %p1106_p9 }
 0x155   : > { %1116 = shalt.err (!%p1113_p1)
}
 0x156   : > { %s1172_s10 = smov 128   ;;  %s1173_s11 = smov 8  }
 0x157   : > { %972 = dma.vmem_to_hbm [thread:$0]  (%p1234_p4), %s1410_s19, 4096, %s1408_s26, %s1418_s15, %s1172_s10, %s1172_s10, %s1173_s11  }
 0x158 PF: > { %p978_p2 = scmp.ge.s32.totalorder %s1167_s17, 2  ;;  %s791_s18 = sand.u32 1, %s1147_s12  }
 0x159   : > { %s792_s21 = scalar_lea.sflag [#allocation3], %s791_s18 }
 0x15a   : > { %p975_p3 = pnand %p978_p2, %p1241_p8 }
 0x15c   : > { %1142 = dma.done.wait (!%p975_p3), %s792_s21, 4096  }
 0x15d   : > { %1144 = vsyncadd (!%p975_p3), %s792_s21, 4294963200  ;;  %s16_s17 = sadd.s32 1, %s1167_s17   ;;  %s1470_s12 = smov %s1151_s13 }
 0x15e   : > { %p13_p5 = scmp.ge.s32.totalorder %s16_s17, 4   ;;  %s1471_s13 = smov %s1155_s14 }
 0x15f   : > { %s1472_s14 = smov %s1247_s25  ;;  %s1473_s15 = smov %s1163_s16 }
 0x160   : > { %s1474_s16 = smov %s1476_s20  ;;  %15 = sbr.rel (!%p13_p5) target bundleno = 4 (0x4), region = 73 }
 0x167   :  { %797 = vsyncpa [#allocation3], 1 }
 0x168   :  { %799 = vsyncpa [#allocation3 + $0x1], 1 }

</bundles_post_ra>
